<compile_context>
chip_gen: v7x
topology: tpu7x:2x2x1
jax: 0.10.0
libtpu: 0.0.40
codegen_flags: <defaults>
</compile_context>

<pallas_src>
import math

import jax
import jax.numpy as jnp
from jax import lax
from jax.experimental import pallas as pl
from jax.experimental.pallas import tpu as pltpu

# ---------------- problem size (consistent with the module) ----------------
B = 2          # batch
S = 8          # n_steps (sequence length)
D = 32         # d_model
H = 2          # n_heads
DK = 16        # d_k
DV = 16        # d_v
DINNER = 64    # d_inner
EPS = 1e-6
INV_TEMP = 1.0 / math.sqrt(DK)

NBS = B * S            # 16  activation rows (batch folded into sublanes)
NHBS = H * B * S       # 32  head-stacked attention rows
QKV_W = DK + DK + DV   # 48  fused projection width


def encoder_kernel(
    x_ref,                    # (NBS, D)        f32   residual-path activations
    xbd_ref,                  # (NHBS, H*D)     bf16  block-diag activations (head-stacked)
    wbd_ref,                  # (H*D, QKV_W)    bf16  per-head-stacked [Wq/temp | Wk | Wv]
    wo_ref,                   # (H, DV, D)      bf16  output projection split per head
    ln1_g_ref, ln1_b_ref,     # (1, D)          f32
    w1_ref,                   # (D, DINNER)     bf16
    b1_ref,                   # (1, DINNER)     f32
    w2_ref,                   # (DINNER, D)     bf16
    b2_ref,                   # (1, D)          f32
    ln2_g_ref, ln2_b_ref,     # (1, D)          f32
    mask_ref,                 # (NHBS, NHBS)    f32   block-diag + causal additive mask
    out_ref,                  # (NBS, D)        f32
    attn_ref,                 # (NHBS, NHBS)    f32   stacked attention probabilities
):
    x = x_ref[...]                                              # (NBS, D) f32

    # ---- fused head-stacked Q/K/V projection: one MXU push ---------------
    qkv = jnp.dot(xbd_ref[...], wbd_ref[...],
                  preferred_element_type=jnp.float32)           # (NHBS, 48) f32
    q = qkv[:, :DK].astype(jnp.bfloat16)                        # (NHBS, DK)
    k = qkv[:, DK:2 * DK].astype(jnp.bfloat16)                  # (NHBS, DK)
    v = qkv[:, 2 * DK:].astype(jnp.bfloat16)                    # (NHBS, DV)

    # ---- block-diagonal attention: one scores matmul / softmax / P@V -----
    s = lax.dot_general(q, k, (((1,), (1,)), ((), ())),
                        preferred_element_type=jnp.float32)     # (NHBS, NHBS)
    s = s + mask_ref[...]                                       # off-block & causal -> -1e9
    m = jnp.max(s, axis=-1, keepdims=True)                      # single batched reduce
    e = jnp.exp(s - m)
    p = e / jnp.sum(e, axis=-1, keepdims=True)                  # exact normalization (f32)
    attn_ref[...] = p                                           # single contiguous store

    ctx = jnp.dot(p.astype(jnp.bfloat16), v,
                  preferred_element_type=jnp.float32)           # (NHBS, DV) f32
    ctx = ctx.astype(jnp.bfloat16)

    # ---- per-head output projection (sublane-aligned row slices) ---------
    attn_out = jnp.dot(ctx[:NBS], wo_ref[0],
                       preferred_element_type=jnp.float32)      # head 0 initializes
    for h in range(1, H):                                       # static unroll
        attn_out = attn_out + jnp.dot(ctx[h * NBS:(h + 1) * NBS], wo_ref[h],
                                      preferred_element_type=jnp.float32)

    # ---- residual + LayerNorm 1 (f32 element-wise) ------------------------
    y = attn_out + x
    mu = jnp.mean(y, axis=-1, keepdims=True)
    var = jnp.mean((y - mu) ** 2, axis=-1, keepdims=True)
    y = (y - mu) * lax.rsqrt(var + EPS) * ln1_g_ref[...] + ln1_b_ref[...]

    # ---- position-wise feed-forward ---------------------------------------
    h1 = jnp.dot(y.astype(jnp.bfloat16), w1_ref[...],
                 preferred_element_type=jnp.float32) + b1_ref[...]
    h1 = jnp.maximum(h1, 0.0)
    h2 = jnp.dot(h1.astype(jnp.bfloat16), w2_ref[...],
                 preferred_element_type=jnp.float32) + b2_ref[...]

    # ---- residual + LayerNorm 2 -------------------------------------------
    z = h2 + y
    mu2 = jnp.mean(z, axis=-1, keepdims=True)
    var2 = jnp.mean((z - mu2) ** 2, axis=-1, keepdims=True)
    z = (z - mu2) * lax.rsqrt(var2 + EPS) * ln2_g_ref[...] + ln2_b_ref[...]

    out_ref[...] = z


def encoder_layer(x, params):
    """x: (B, S, D) f32 -> (enc_out (B, S, D), attn (B, H, S, S))."""
    (wq, wk, wv, wo, ln1_g, ln1_b, w1, b1, w2, b2, ln2_g, ln2_b) = params

    # ---- wrapper-side layout plumbing (free XLA ops, outside the kernel) --
    x2 = x.reshape(NBS, D)                                       # batch folded into rows

    # Block-diagonal activations, rows ordered (head, batch, seq).
    x_bd = jnp.kron(jnp.eye(H, dtype=x2.dtype), x2).astype(jnp.bfloat16)  # (NHBS, H*D)

    # Per-head-stacked fused projection weight; 1/sqrt(d_k) (power of two,
    # exact) folded into the Q columns.
    wq_s = wq * jnp.float32(INV_TEMP)
    w_bd = jnp.concatenate([
        jnp.concatenate([wq_s[:, h * DK:(h + 1) * DK],
                         wk[:, h * DK:(h + 1) * DK],
                         wv[:, h * DV:(h + 1) * DV]], axis=1)
        for h in range(H)], axis=0).astype(jnp.bfloat16)         # (H*D, 48)

    wo_heads = wo.reshape(H, DV, D).astype(jnp.bfloat16)

    # Additive mask: -1e9 off the (head, batch) diagonal blocks, plus causal
    # (-1e9 strictly-upper) inside each block.
    eye_hb = jnp.eye(H * B, dtype=jnp.float32)
    off_block = 1.0 - jnp.kron(eye_hb, jnp.ones((S, S), jnp.float32))
    causal = jnp.kron(eye_hb, jnp.triu(jnp.ones((S, S), jnp.float32), k=1))
    mask = (off_block + causal) * jnp.float32(-1e9)              # (NHBS, NHBS)

    args = (x2, x_bd, w_bd, wo_heads, ln1_g, ln1_b,
            w1.astype(jnp.bfloat16), b1, w2.astype(jnp.bfloat16), b2,
            ln2_g, ln2_b, mask)

    def full(a):
        nd = a.ndim
        return pl.BlockSpec(a.shape, lambda g, _nd=nd: (0,) * _nd)

    out_flat, attn_flat = pl.pallas_call(
        encoder_kernel,
        out_shape=(
            jax.ShapeDtypeStruct((NBS, D), jnp.float32),
            jax.ShapeDtypeStruct((NHBS, NHBS), jnp.float32),
        ),
        grid_spec=pltpu.PrefetchScalarGridSpec(
            num_scalar_prefetch=0,
            grid=(1,),                                           # one invocation, all gens
            in_specs=[full(a) for a in args],
            out_specs=[
                pl.BlockSpec((NBS, D), lambda g: (0, 0)),
                pl.BlockSpec((NHBS, NHBS), lambda g: (0, 0)),
            ],
        ),
        compiler_params=pltpu.CompilerParams(
            dimension_semantics=("arbitrary",)),
    )(*args)

    enc_out = out_flat.reshape(B, S, D)

    # Extract the (head, batch) diagonal blocks of the stacked probabilities
    # and restore the PyTorch (B, H, S, S) layout (wrapper-side, free).
    p4 = attn_flat.reshape(H * B, S, H * B, S)
    idx = jnp.arange(H * B)
    attn = p4[idx, :, idx, :].reshape(H, B, S, S).transpose(1, 0, 2, 3)
    return enc_out, attn


def init_params(key):
    ks = jax.random.split(key, 8)
    scale = 0.02
    wq = scale * jax.random.normal(ks[0], (D, H * DK), jnp.float32)
    wk = scale * jax.random.normal(ks[1], (D, H * DK), jnp.float32)
    wv = scale * jax.random.normal(ks[2], (D, H * DV), jnp.float32)
    wo = scale * jax.random.normal(ks[3], (H * DV, D), jnp.float32)
    ln1_g = jnp.ones((1, D), jnp.float32)
    ln1_b = jnp.zeros((1, D), jnp.float32)
    w1 = scale * jax.random.normal(ks[4], (D, DINNER), jnp.float32)
    b1 = scale * jax.random.normal(ks[5], (1, DINNER), jnp.float32)
    w2 = scale * jax.random.normal(ks[6], (DINNER, D), jnp.float32)
    b2 = scale * jax.random.normal(ks[7], (1, D), jnp.float32)
    ln2_g = jnp.ones((1, D), jnp.float32)
    ln2_b = jnp.zeros((1, D), jnp.float32)
    return (wq, wk, wv, wo, ln1_g, ln1_b, w1, b1, w2, b2, ln2_g, ln2_b)


def reference(x, params):
    """Pure-JAX reference of EncoderLayer.forward (eval mode, src_mask=None)."""
    (wq, wk, wv, wo, ln1_g, ln1_b, w1, b1, w2, b2, ln2_g, ln2_b) = params
    bsz, steps, _ = x.shape
    temp = math.sqrt(DK)
    q = (x @ wq).reshape(bsz, steps, H, DK).transpose(0, 2, 1, 3)
    k = (x @ wk).reshape(bsz, steps, H, DK).transpose(0, 2, 1, 3)
    v = (x @ wv).reshape(bsz, steps, H, DV).transpose(0, 2, 1, 3)
    s = jnp.einsum("bhqd,bhkd->bhqk", q / temp, k)
    causal = jnp.triu(jnp.ones((steps, steps)), k=1) == 1
    s = jnp.where(causal[None, None], -1e9, s)
    p = jax.nn.softmax(s, axis=-1)
    ctx = jnp.einsum("bhqk,bhkd->bhqd", p, v).transpose(0, 2, 1, 3)
    ctx = ctx.reshape(bsz, steps, H * DV)
    y = ctx @ wo + x
    mu = y.mean(-1, keepdims=True)
    var = ((y - mu) ** 2).mean(-1, keepdims=True)
    y = (y - mu) / jnp.sqrt(var + EPS) * ln1_g[0] + ln1_b[0]
    h1 = jax.nn.relu(y @ w1 + b1[0])
    z = h1 @ w2 + b2[0] + y
    mu2 = z.mean(-1, keepdims=True)
    var2 = ((z - mu2) ** 2).mean(-1, keepdims=True)
    z = (z - mu2) / jnp.sqrt(var2 + EPS) * ln2_g[0] + ln2_b[0]
    return z, p


if __name__ == "__main__":
    key = jax.random.PRNGKey(0)
    kx, kp = jax.random.split(key)
    x = jax.random.normal(kx, (B, S, D), jnp.float32)
    params = init_params(kp)

    enc_out, attn = encoder_layer(x, params)
    enc_out = jax.block_until_ready(enc_out)
    attn = jax.block_until_ready(attn)

    ref_out, ref_attn = reference(x, params)
    # Tolerances account for explicit bf16 MXU operands (f32 accumulation).
    assert jnp.allclose(attn, ref_attn, atol=2e-3, rtol=2e-3), \
        float(jnp.max(jnp.abs(attn - ref_attn)))
    assert jnp.allclose(enc_out, ref_out, atol=2e-3, rtol=2e-3), \
        float(jnp.max(jnp.abs(enc_out - ref_out)))

    print("KERNEL_OK")
</pallas_src>

<mosaic_0001>
module attributes {stable_mosaic.version = 11 : i64} {
  func.func @encoder_kernel(%arg0: i32, %arg1: memref<16x32xf32, #tpu.memory_space<vmem>>, %arg2: memref<32x64xbf16, #tpu.memory_space<vmem>>, %arg3: memref<64x48xbf16, #tpu.memory_space<vmem>>, %arg4: memref<2x16x32xbf16, #tpu.memory_space<vmem>>, %arg5: memref<1x32xf32, #tpu.memory_space<vmem>>, %arg6: memref<1x32xf32, #tpu.memory_space<vmem>>, %arg7: memref<32x64xbf16, #tpu.memory_space<vmem>>, %arg8: memref<1x64xf32, #tpu.memory_space<vmem>>, %arg9: memref<64x32xbf16, #tpu.memory_space<vmem>>, %arg10: memref<1x32xf32, #tpu.memory_space<vmem>>, %arg11: memref<1x32xf32, #tpu.memory_space<vmem>>, %arg12: memref<1x32xf32, #tpu.memory_space<vmem>>, %arg13: memref<32x32xf32, #tpu.memory_space<vmem>>, %arg14: memref<16x32xf32, #tpu.memory_space<vmem>>, %arg15: memref<32x32xf32, #tpu.memory_space<vmem>>) attributes {dimension_semantics = [#tpu.dimension_semantics<arbitrary>], iteration_bounds = array<i64: 1>, scalar_prefetch = 0 : i64, scratch_operands = 0 : i64, tpu.core_type = #tpu.core_type<tc>, window_params = [{pipeline_mode = #tpu.pipeline_mode<synchronous>, transform_indices = @transform_0, window_bounds = array<i64: 16, 32>}, {pipeline_mode = #tpu.pipeline_mode<synchronous>, transform_indices = @transform_1, window_bounds = array<i64: 32, 64>}, {pipeline_mode = #tpu.pipeline_mode<synchronous>, transform_indices = @transform_2, window_bounds = array<i64: 64, 48>}, {pipeline_mode = #tpu.pipeline_mode<synchronous>, transform_indices = @transform_3, window_bounds = array<i64: 2, 16, 32>}, {pipeline_mode = #tpu.pipeline_mode<synchronous>, transform_indices = @transform_4, window_bounds = array<i64: 1, 32>}, {pipeline_mode = #tpu.pipeline_mode<synchronous>, transform_indices = @transform_5, window_bounds = array<i64: 1, 32>}, {pipeline_mode = #tpu.pipeline_mode<synchronous>, transform_indices = @transform_6, window_bounds = array<i64: 32, 64>}, {pipeline_mode = #tpu.pipeline_mode<synchronous>, transform_indices = @transform_7, window_bounds = array<i64: 1, 64>}, {pipeline_mode = #tpu.pipeline_mode<synchronous>, transform_indices = @transform_8, window_bounds = array<i64: 64, 32>}, {pipeline_mode = #tpu.pipeline_mode<synchronous>, transform_indices = @transform_9, window_bounds = array<i64: 1, 32>}, {pipeline_mode = #tpu.pipeline_mode<synchronous>, transform_indices = @transform_10, window_bounds = array<i64: 1, 32>}, {pipeline_mode = #tpu.pipeline_mode<synchronous>, transform_indices = @transform_11, window_bounds = array<i64: 1, 32>}, {pipeline_mode = #tpu.pipeline_mode<synchronous>, transform_indices = @transform_12, window_bounds = array<i64: 32, 32>}, {pipeline_mode = #tpu.pipeline_mode<synchronous>, transform_indices = @transform_13, window_bounds = array<i64: 16, 32>}, {pipeline_mode = #tpu.pipeline_mode<synchronous>, transform_indices = @transform_14, window_bounds = array<i64: 32, 32>}]} {
    %c0 = arith.constant 0 : index
    %c0_0 = arith.constant 0 : index
    %0 = vector.load %arg1[%c0, %c0_0] : memref<16x32xf32, #tpu.memory_space<vmem>>, vector<16x32xf32>
    %c0_1 = arith.constant 0 : index
    %c0_2 = arith.constant 0 : index
    %1 = vector.load %arg2[%c0_1, %c0_2] : memref<32x64xbf16, #tpu.memory_space<vmem>>, vector<32x64xbf16>
    %c0_3 = arith.constant 0 : index
    %c0_4 = arith.constant 0 : index
    %2 = vector.load %arg3[%c0_3, %c0_4] : memref<64x48xbf16, #tpu.memory_space<vmem>>, vector<64x48xbf16>
    %cst = arith.constant dense<0.000000e+00> : vector<32x48xf32>
    %3 = tpu.matmul %1, %2, %cst {dimension_numbers = #tpu.dot_dimension_numbers<[1], [0], [0], [1], [0, 0, 1, 1], [], []>} : vector<32x64xbf16>, vector<64x48xbf16>, vector<32x48xf32> -> vector<32x48xf32>
    %4 = vector.extract_strided_slice %3 {offsets = [0, 0], sizes = [32, 16], strides = [1, 1]} : vector<32x48xf32> to vector<32x16xf32>
    %5 = arith.truncf %4 : vector<32x16xf32> to vector<32x16xbf16>
    %6 = vector.extract_strided_slice %3 {offsets = [0, 16], sizes = [32, 16], strides = [1, 1]} : vector<32x48xf32> to vector<32x16xf32>
    %7 = arith.truncf %6 : vector<32x16xf32> to vector<32x16xbf16>
    %8 = vector.extract_strided_slice %3 {offsets = [0, 32], sizes = [32, 16], strides = [1, 1]} : vector<32x48xf32> to vector<32x16xf32>
    %9 = arith.truncf %8 : vector<32x16xf32> to vector<32x16xbf16>
    %cst_5 = arith.constant dense<0.000000e+00> : vector<32x32xf32>
    %10 = tpu.matmul %5, %7, %cst_5 {dimension_numbers = #tpu.dot_dimension_numbers<[1], [1], [0], [0], [0, 0, 1, 0], [], []>} : vector<32x16xbf16>, vector<32x16xbf16>, vector<32x32xf32> -> vector<32x32xf32>
    %c0_6 = arith.constant 0 : index
    %c0_7 = arith.constant 0 : index
    %11 = vector.load %arg13[%c0_6, %c0_7] : memref<32x32xf32, #tpu.memory_space<vmem>>, vector<32x32xf32>
    %12 = arith.addf %10, %11 : vector<32x32xf32>
    %cst_8 = arith.constant dense<0xFF800000> : vector<32xf32>
    %13 = vector.multi_reduction <maximumf>, %12, %cst_8 [1] : vector<32x32xf32> to vector<32xf32>
    %14 = vector.shape_cast %13 : vector<32xf32> to vector<32x1xf32>
    %15 = vector.broadcast %14 : vector<32x1xf32> to vector<32x32xf32>
    %16 = arith.subf %12, %15 : vector<32x32xf32>
    %17 = math.exp %16 : vector<32x32xf32>
    %cst_9 = arith.constant dense<0.000000e+00> : vector<32xf32>
    %18 = vector.multi_reduction <add>, %17, %cst_9 [1] : vector<32x32xf32> to vector<32xf32>
    %19 = vector.shape_cast %18 : vector<32xf32> to vector<32x1xf32>
    %20 = vector.broadcast %19 : vector<32x1xf32> to vector<32x32xf32>
    %21 = arith.divf %17, %20 : vector<32x32xf32>
    %c0_10 = arith.constant 0 : index
    %c0_11 = arith.constant 0 : index
    %22 = vector.load %arg15[%c0_10, %c0_11] : memref<32x32xf32, #tpu.memory_space<vmem>>, vector<32x32xf32>
    tpu.vector_store %arg15[%c0_10, %c0_11], %21 {strides = array<i32>} : memref<32x32xf32, #tpu.memory_space<vmem>>, vector<32x32xf32>,
    %23 = arith.truncf %21 : vector<32x32xf32> to vector<32x32xbf16>
    %cst_12 = arith.constant dense<0.000000e+00> : vector<32x16xf32>
    %24 = tpu.matmul %23, %9, %cst_12 {dimension_numbers = #tpu.dot_dimension_numbers<[1], [0], [0], [1], [0, 0, 1, 1], [], []>} : vector<32x32xbf16>, vector<32x16xbf16>, vector<32x16xf32> -> vector<32x16xf32>
    %25 = arith.truncf %24 : vector<32x16xf32> to vector<32x16xbf16>
    %26 = vector.extract_strided_slice %25 {offsets = [0, 0], sizes = [16, 16], strides = [1, 1]} : vector<32x16xbf16> to vector<16x16xbf16>
    %c0_13 = arith.constant 0 : index
    %c0_14 = arith.constant 0 : index
    %c0_15 = arith.constant 0 : index
    %27 = vector.load %arg4[%c0_13, %c0_14, %c0_15] : memref<2x16x32xbf16, #tpu.memory_space<vmem>>, vector<1x16x32xbf16>
    %28 = vector.shape_cast %27 : vector<1x16x32xbf16> to vector<16x32xbf16>
    %cst_16 = arith.constant dense<0.000000e+00> : vector<16x32xf32>
    %29 = tpu.matmul %26, %28, %cst_16 {dimension_numbers = #tpu.dot_dimension_numbers<[1], [0], [0], [1], [0, 0, 1, 1], [], []>} : vector<16x16xbf16>, vector<16x32xbf16>, vector<16x32xf32> -> vector<16x32xf32>
    %30 = vector.extract_strided_slice %25 {offsets = [16, 0], sizes = [16, 16], strides = [1, 1]} : vector<32x16xbf16> to vector<16x16xbf16>
    %c1 = arith.constant 1 : index
    %c0_17 = arith.constant 0 : index
    %c0_18 = arith.constant 0 : index
    %31 = vector.load %arg4[%c1, %c0_17, %c0_18] : memref<2x16x32xbf16, #tpu.memory_space<vmem>>, vector<1x16x32xbf16>
    %32 = vector.shape_cast %31 : vector<1x16x32xbf16> to vector<16x32xbf16>
    %cst_19 = arith.constant dense<0.000000e+00> : vector<16x32xf32>
    %33 = tpu.matmul %30, %32, %cst_19 {dimension_numbers = #tpu.dot_dimension_numbers<[1], [0], [0], [1], [0, 0, 1, 1], [], []>} : vector<16x16xbf16>, vector<16x32xbf16>, vector<16x32xf32> -> vector<16x32xf32>
    %34 = arith.addf %29, %33 : vector<16x32xf32>
    %35 = arith.addf %34, %0 : vector<16x32xf32>
    %cst_20 = arith.constant dense<0.000000e+00> : vector<16xf32>
    %36 = vector.multi_reduction <add>, %35, %cst_20 [1] : vector<16x32xf32> to vector<16xf32>
    %37 = vector.shape_cast %36 : vector<16xf32> to vector<16x1xf32>
    %cst_21 = arith.constant 3.200000e+01 : f32
    %38 = vector.broadcast %cst_21 : f32 to vector<16x1xf32>
    %39 = arith.divf %37, %38 : vector<16x1xf32>
    %40 = vector.broadcast %39 : vector<16x1xf32> to vector<16x32xf32>
    %41 = arith.subf %35, %40 : vector<16x32xf32>
    %42 = arith.mulf %41, %41 : vector<16x32xf32>
    %cst_22 = arith.constant dense<0.000000e+00> : vector<16xf32>
    %43 = vector.multi_reduction <add>, %42, %cst_22 [1] : vector<16x32xf32> to vector<16xf32>
    %44 = vector.shape_cast %43 : vector<16xf32> to vector<16x1xf32>
    %cst_23 = arith.constant 3.200000e+01 : f32
    %45 = vector.broadcast %cst_23 : f32 to vector<16x1xf32>
    %46 = arith.divf %44, %45 : vector<16x1xf32>
    %47 = vector.broadcast %39 : vector<16x1xf32> to vector<16x32xf32>
    %48 = arith.subf %35, %47 : vector<16x32xf32>
    %cst_24 = arith.constant 9.99999997E-7 : f32
    %49 = vector.broadcast %cst_24 : f32 to vector<16x1xf32>
    %50 = arith.addf %46, %49 : vector<16x1xf32>
    %51 = math.rsqrt %50 : vector<16x1xf32>
    %52 = vector.broadcast %51 : vector<16x1xf32> to vector<16x32xf32>
    %53 = arith.mulf %48, %52 : vector<16x32xf32>
    %c0_25 = arith.constant 0 : index
    %c0_26 = arith.constant 0 : index
    %54 = vector.load %arg5[%c0_25, %c0_26] : memref<1x32xf32, #tpu.memory_space<vmem>>, vector<1x32xf32>
    %55 = vector.broadcast %54 : vector<1x32xf32> to vector<16x32xf32>
    %56 = arith.mulf %53, %55 : vector<16x32xf32>
    %c0_27 = arith.constant 0 : index
    %c0_28 = arith.constant 0 : index
    %57 = vector.load %arg6[%c0_27, %c0_28] : memref<1x32xf32, #tpu.memory_space<vmem>>, vector<1x32xf32>
    %58 = vector.broadcast %57 : vector<1x32xf32> to vector<16x32xf32>
    %59 = arith.addf %56, %58 : vector<16x32xf32>
    %60 = arith.truncf %59 : vector<16x32xf32> to vector<16x32xbf16>
    %c0_29 = arith.constant 0 : index
    %c0_30 = arith.constant 0 : index
    %61 = vector.load %arg7[%c0_29, %c0_30] : memref<32x64xbf16, #tpu.memory_space<vmem>>, vector<32x64xbf16>
    %cst_31 = arith.constant dense<0.000000e+00> : vector<16x64xf32>
    %62 = tpu.matmul %60, %61, %cst_31 {dimension_numbers = #tpu.dot_dimension_numbers<[1], [0], [0], [1], [0, 0, 1, 1], [], []>} : vector<16x32xbf16>, vector<32x64xbf16>, vector<16x64xf32> -> vector<16x64xf32>
    %c0_32 = arith.constant 0 : index
    %c0_33 = arith.constant 0 : index
    %63 = vector.load %arg8[%c0_32, %c0_33] : memref<1x64xf32, #tpu.memory_space<vmem>>, vector<1x64xf32>
    %64 = vector.broadcast %63 : vector<1x64xf32> to vector<16x64xf32>
    %65 = arith.addf %62, %64 : vector<16x64xf32>
    %cst_34 = arith.constant 0.000000e+00 : f32
    %66 = vector.broadcast %cst_34 : f32 to vector<16x64xf32>
    %67 = arith.maximumf %65, %66 : vector<16x64xf32>
    %68 = arith.truncf %67 : vector<16x64xf32> to vector<16x64xbf16>
    %c0_35 = arith.constant 0 : index
    %c0_36 = arith.constant 0 : index
    %69 = vector.load %arg9[%c0_35, %c0_36] : memref<64x32xbf16, #tpu.memory_space<vmem>>, vector<64x32xbf16>
    %cst_37 = arith.constant dense<0.000000e+00> : vector<16x32xf32>
    %70 = tpu.matmul %68, %69, %cst_37 {dimension_numbers = #tpu.dot_dimension_numbers<[1], [0], [0], [1], [0, 0, 1, 1], [], []>} : vector<16x64xbf16>, vector<64x32xbf16>, vector<16x32xf32> -> vector<16x32xf32>
    %c0_38 = arith.constant 0 : index
    %c0_39 = arith.constant 0 : index
    %71 = vector.load %arg10[%c0_38, %c0_39] : memref<1x32xf32, #tpu.memory_space<vmem>>, vector<1x32xf32>
    %72 = vector.broadcast %71 : vector<1x32xf32> to vector<16x32xf32>
    %73 = arith.addf %70, %72 : vector<16x32xf32>
    %74 = arith.addf %73, %59 : vector<16x32xf32>
    %cst_40 = arith.constant dense<0.000000e+00> : vector<16xf32>
    %75 = vector.multi_reduction <add>, %74, %cst_40 [1] : vector<16x32xf32> to vector<16xf32>
    %76 = vector.shape_cast %75 : vector<16xf32> to vector<16x1xf32>
    %cst_41 = arith.constant 3.200000e+01 : f32
    %77 = vector.broadcast %cst_41 : f32 to vector<16x1xf32>
    %78 = arith.divf %76, %77 : vector<16x1xf32>
    %79 = vector.broadcast %78 : vector<16x1xf32> to vector<16x32xf32>
    %80 = arith.subf %74, %79 : vector<16x32xf32>
    %81 = arith.mulf %80, %80 : vector<16x32xf32>
    %cst_42 = arith.constant dense<0.000000e+00> : vector<16xf32>
    %82 = vector.multi_reduction <add>, %81, %cst_42 [1] : vector<16x32xf32> to vector<16xf32>
    %83 = vector.shape_cast %82 : vector<16xf32> to vector<16x1xf32>
    %cst_43 = arith.constant 3.200000e+01 : f32
    %84 = vector.broadcast %cst_43 : f32 to vector<16x1xf32>
    %85 = arith.divf %83, %84 : vector<16x1xf32>
    %86 = vector.broadcast %78 : vector<16x1xf32> to vector<16x32xf32>
    %87 = arith.subf %74, %86 : vector<16x32xf32>
    %cst_44 = arith.constant 9.99999997E-7 : f32
    %88 = vector.broadcast %cst_44 : f32 to vector<16x1xf32>
    %89 = arith.addf %85, %88 : vector<16x1xf32>
    %90 = math.rsqrt %89 : vector<16x1xf32>
    %91 = vector.broadcast %90 : vector<16x1xf32> to vector<16x32xf32>
    %92 = arith.mulf %87, %91 : vector<16x32xf32>
    %c0_45 = arith.constant 0 : index
    %c0_46 = arith.constant 0 : index
    %93 = vector.load %arg11[%c0_45, %c0_46] : memref<1x32xf32, #tpu.memory_space<vmem>>, vector<1x32xf32>
    %94 = vector.broadcast %93 : vector<1x32xf32> to vector<16x32xf32>
    %95 = arith.mulf %92, %94 : vector<16x32xf32>
    %c0_47 = arith.constant 0 : index
    %c0_48 = arith.constant 0 : index
    %96 = vector.load %arg12[%c0_47, %c0_48] : memref<1x32xf32, #tpu.memory_space<vmem>>, vector<1x32xf32>
    %97 = vector.broadcast %96 : vector<1x32xf32> to vector<16x32xf32>
    %98 = arith.addf %95, %97 : vector<16x32xf32>
    %c0_49 = arith.constant 0 : index
    %c0_50 = arith.constant 0 : index
    %99 = vector.load %arg14[%c0_49, %c0_50] : memref<16x32xf32, #tpu.memory_space<vmem>>, vector<16x32xf32>
    tpu.vector_store %arg14[%c0_49, %c0_50], %98 {strides = array<i32>} : memref<16x32xf32, #tpu.memory_space<vmem>>, vector<16x32xf32>,
    return
  }
  func.func @transform_0(%arg0: i32) -> (i32, i32) {
    %c0_i32 = arith.constant 0 : i32
    %c0_i32_0 = arith.constant 0 : i32
    %c0_i32_1 = arith.constant 0 : i32
    return %c0_i32, %c0_i32_0 : i32, i32
  }
  func.func @transform_1(%arg0: i32) -> (i32, i32) {
    %c0_i32 = arith.constant 0 : i32
    %c0_i32_0 = arith.constant 0 : i32
    %c0_i32_1 = arith.constant 0 : i32
    return %c0_i32, %c0_i32_0 : i32, i32
  }
  func.func @transform_2(%arg0: i32) -> (i32, i32) {
    %c0_i32 = arith.constant 0 : i32
    %c0_i32_0 = arith.constant 0 : i32
    %c0_i32_1 = arith.constant 0 : i32
    return %c0_i32, %c0_i32_0 : i32, i32
  }
  func.func @transform_3(%arg0: i32) -> (i32, i32, i32) {
    %c0_i32 = arith.constant 0 : i32
    %c0_i32_0 = arith.constant 0 : i32
    %c0_i32_1 = arith.constant 0 : i32
    %c0_i32_2 = arith.constant 0 : i32
    return %c0_i32, %c0_i32_0, %c0_i32_1 : i32, i32, i32
  }
  func.func @transform_4(%arg0: i32) -> (i32, i32) {
    %c0_i32 = arith.constant 0 : i32
    %c0_i32_0 = arith.constant 0 : i32
    %c0_i32_1 = arith.constant 0 : i32
    return %c0_i32, %c0_i32_0 : i32, i32
  }
  func.func @transform_5(%arg0: i32) -> (i32, i32) {
    %c0_i32 = arith.constant 0 : i32
    %c0_i32_0 = arith.constant 0 : i32
    %c0_i32_1 = arith.constant 0 : i32
    return %c0_i32, %c0_i32_0 : i32, i32
  }
  func.func @transform_6(%arg0: i32) -> (i32, i32) {
    %c0_i32 = arith.constant 0 : i32
    %c0_i32_0 = arith.constant 0 : i32
    %c0_i32_1 = arith.constant 0 : i32
    return %c0_i32, %c0_i32_0 : i32, i32
  }
  func.func @transform_7(%arg0: i32) -> (i32, i32) {
    %c0_i32 = arith.constant 0 : i32
    %c0_i32_0 = arith.constant 0 : i32
    %c0_i32_1 = arith.constant 0 : i32
    return %c0_i32, %c0_i32_0 : i32, i32
  }
  func.func @transform_8(%arg0: i32) -> (i32, i32) {
    %c0_i32 = arith.constant 0 : i32
    %c0_i32_0 = arith.constant 0 : i32
    %c0_i32_1 = arith.constant 0 : i32
    return %c0_i32, %c0_i32_0 : i32, i32
  }
  func.func @transform_9(%arg0: i32) -> (i32, i32) {
    %c0_i32 = arith.constant 0 : i32
    %c0_i32_0 = arith.constant 0 : i32
    %c0_i32_1 = arith.constant 0 : i32
    return %c0_i32, %c0_i32_0 : i32, i32
  }
  func.func @transform_10(%arg0: i32) -> (i32, i32) {
    %c0_i32 = arith.constant 0 : i32
    %c0_i32_0 = arith.constant 0 : i32
    %c0_i32_1 = arith.constant 0 : i32
    return %c0_i32, %c0_i32_0 : i32, i32
  }
  func.func @transform_11(%arg0: i32) -> (i32, i32) {
    %c0_i32 = arith.constant 0 : i32
    %c0_i32_0 = arith.constant 0 : i32
    %c0_i32_1 = arith.constant 0 : i32
    return %c0_i32, %c0_i32_0 : i32, i32
  }
  func.func @transform_12(%arg0: i32) -> (i32, i32) {
    %c0_i32 = arith.constant 0 : i32
    %c0_i32_0 = arith.constant 0 : i32
    %c0_i32_1 = arith.constant 0 : i32
    return %c0_i32, %c0_i32_0 : i32, i32
  }
  func.func @transform_13(%arg0: i32) -> (i32, i32) {
    %c0_i32 = arith.constant 0 : i32
    %c0_i32_0 = arith.constant 0 : i32
    %c0_i32_1 = arith.constant 0 : i32
    return %c0_i32, %c0_i32_0 : i32, i32
  }
  func.func @transform_14(%arg0: i32) -> (i32, i32) {
    %c0_i32 = arith.constant 0 : i32
    %c0_i32_0 = arith.constant 0 : i32
    %c0_i32_1 = arith.constant 0 : i32
    return %c0_i32, %c0_i32_0 : i32, i32
  }
}

</mosaic_0001>

<bundles_post_ra>
// kernel: tpu_custom_call.1
= control target key start
LH: loop header
LB: loop body
LE: loop exit
PB: predicated region body
PF: predicated region fallthrough
CT: control target
= control target key end

     0   :  { %20 = vsyncpa [#allocation3], 0  ;;  %vm97_vm0 = vcmask 523264   ;;  %s1185_s0 = inlined_call_operand.vmem [shape: f32[16,32], index: 0, kind: input, shape index: {}]   ;;  %s1186_s1 = inlined_call_operand.vmem [shape: bf16[32,64], index: 1, kind: input, shape index: {}]   ;;  %s1187_s2 = inlined_call_operand.vmem [shape: bf16[64,48], index: 2, kind: input, shape index: {}]   ;;  %s1188_s3 = inlined_call_operand.vmem [shape: bf16[2,16,32], index: 3, kind: input, shape index: {}]   ;;  %s1189_s4 = inlined_call_operand.vmem [shape: f32[1,32], index: 4, kind: input, shape index: {}]   ;;  %s1190_s5 = inlined_call_operand.vmem [shape: f32[1,32], index: 5, kind: input, shape index: {}]   ;;  %s1191_s6 = inlined_call_operand.vmem [shape: bf16[32,64], index: 6, kind: input, shape index: {}]   ;;  %s1192_s7 = inlined_call_operand.vmem [shape: f32[1,64], index: 7, kind: input, shape index: {}]   ;;  %s1193_s8 = inlined_call_operand.vmem [shape: bf16[64,32], index: 8, kind: input, shape index: {}]   ;;  %s1194_s9 = inlined_call_operand.vmem [shape: f32[1,32], index: 9, kind: input, shape index: {}]   ;;  %s1195_s10 = inlined_call_operand.vmem [shape: f32[1,32], index: 10, kind: input, shape index: {}]   ;;  %s1196_s11 = inlined_call_operand.vmem [shape: f32[1,32], index: 11, kind: input, shape index: {}]   ;;  %s1197_s12 = inlined_call_operand.vmem [shape: f32[32,32], index: 12, kind: input, shape index: {}]   ;;  %s1198_s13 = inlined_call_operand.hbm [shape: f32[16,32], index: 13, kind: output, shape index: {0}]   ;;  %s1199_s14 = inlined_call_operand.hbm [shape: f32[32,32], index: 14, kind: output, shape index: {1}]  }
   0x1   :  { %v855_v0 = vld [vmem:[%s1187_s2] sm:$0xff]   ;;  %v856_v1 = vld [vmem:[%s1187_s2 + $0x8] sm:$0xff]   ;;  %v857_v2 = vld [vmem:[%s1187_s2 + $0x10] sm:$0xff]  }
   0x2   :  { %785 = vmatprep.subr.bf16.mxu0 %v855_v0  ;;  %v859_v3 = vld [vmem:[%s1186_s1] sm:$0xff]   ;;  %v858_v4 = vld [vmem:[%s1187_s2 + $0x18] sm:$0xff]  }
   0x3   :  { %786 = vmatpush3.bf16.msra.mxu0 %v855_v0  ;;  %793 = vmatprep.mubr.msk.bf16.mxu0 %vm97_vm0, %v859_v3 }
   0x4   :  { %787 = vmatprep.subr.bf16.mxu0 %v856_v1 }
   0x7   :  { %788 = vmatpush3.bf16.msra.mxu0 %v856_v1 }
   0x8   :  { %789 = vmatprep.subr.bf16.mxu0 %v857_v2 }
   0xb   :  { %790 = vmatpush3.bf16.msra.mxu0 %v857_v2 }
   0xc   :  { %21 = vsyncpa [#allocation5], 0  ;;  %791 = vmatprep.subr.bf16.mxu0 %v858_v4  ;;  %v860_v5 = vld [vmem:[%s1186_s1 + $0x8] sm:$0xff]   ;;  %vm165_vm1 = vcmask 130048   ;;  %s941_s2 = smov 112   ;;  %v157_v16 = vld [vmem:[%s1197_s12 + $0x10] sm:$0xff] }
   0xd   :  { %v155_v17 = vld [vmem:[%s1197_s12] sm:$0xff]  ;;  %vm227_vm2 = vcmask 261120   ;;  %v156_v21 = vld [vmem:[%s1197_s12 + $0x8] sm:$0xff]  ;;  %v158_v28 = vld [vmem:[%s1197_s12 + $0x18] sm:$0xff]  ;;  %s942_s16 = smov 96   ;;  %v943_v52 = vmov 0.0  }
   0xe   :  { %v862_v53 = vld [vmem:[%s1188_s3] sm:$0xff]   ;;  %vm944_vm3 = vmmov 0  }
   0xf   :  { %792 = vmatpush3.bf16.msra.mxu0 %v858_v4 }
  0x10   :  { %819 = vmatprep.subr.bf16.mxu0 %v943_v52 }
  0x12   :  { %794 = vmatmul.mubr.msk.bf16.vlgmr.msra.gmra.mrb[0].mxu0 %vm97_vm0, %v860_v5  ;;  %v861_v5 = vld [vmem:[%s1188_s3 + $0x8] sm:$0xff]  }
  0x13   :  { %820 = vmatpush3.bf16.msra.mxu0 %v862_v53  ;;  %821 = vmatprep.mubr.msk.bf16.mxu0 %vm944_vm3, %v943_v52 }
  0x14   :  { %833 = vmatprep.subr.bf16.mxu0 %v943_v52 }
  0xe5   :  { %v795_v6 = vpop.f32.mrb[0].mxu0 }
  0xe6   :  { %v138_v7 = vpop.f32.mrb[1].mxu0 }
  0xe7   :  { %v796_v8 = vpop.f32.mrb[2].mxu0 }
  0xe8   :  { %v154_v9 = vpack.c.bf16 %v796_v8, %v795_v6  ;;  %v141_v10 = vpop.f32.mrb[3].mxu0 }
  0xe9   :  { %v1044_v11 = vpack.c.bf16 %v141_v10, %v138_v7 }
  0xeb   :  { %161 = vrot.lane.b32.xlu0 %v1044_v11, %s941_s2  ;;  %801 = vmatprep.mubr.msk.bf16.mxu1 %vm165_vm1, %v1044_v11 }
  0xef   :  { %163 = vrot.lane.b32.xlu0 %v154_v9, %s941_s2 }
 0x15d   :  { %v162_v12 = vpop.permute.xlu0 %161 }
 0x15e   :  { %845 = vmatprep.subr.msk.bf16.mxu1 %vm165_vm1, %v162_v12  ;;  %v173_v13 = vsel %vm165_vm1, %v162_v12, 0 }
 0x15f   :  { %798 = vmatpush3.bf16.xpose.msra.mxu1 %v173_v13 }
 0x161   :  { %v164_v14 = vpop.permute.xlu0 %163 }
 0x162   :  { %846 = vmatprep.subr.msk.bf16.mxu1 %vm165_vm1, %v164_v14  ;;  %v176_v15 = vsel %vm165_vm1, %v164_v14, 0 }
 0x167   :  { %800 = vmatpush3.bf16.xpose.msra.mxu1 %v176_v15 }
 0x16e   :  { %802 = vmatmul.mubr.msk.bf16.vlgmr.msra.gmra.mrb[0].mxu1 %vm165_vm1, %v154_v9 }
 0x241   :  { %v803_v18 = vpop.f32.mrb[0].mxu1 }
 0x242   :  { %v221_v19 = vadd.f32 %v803_v18, %v157_v16  ;;  %v212_v20 = vpop.f32.mrb[1].mxu1  ;;  %v49_v16 = vld [vmem:[%s1185_s0] sm:$0xff] }
 0x243   :  { %v213_v22 = vadd.f32 %v212_v20, %v155_v17  ;;  %v804_v23 = vpop.f32.mrb[2].mxu1 }
 0x244   :  { %v215_v24 = vpop.f32.mrb[3].mxu1  ;;  %v234_v25 = vsel %vm227_vm2, %v221_v19, -inf  ;;  %v224_v29 = vadd.f32 %v804_v23, %v158_v28 }
 0x245   :  { %v216_v26 = vadd.f32 %v215_v24, %v156_v21  ;;  %235 = vmax.xlane.f32.xlu0 %v234_v25  ;;  %v228_v27 = vsel %vm227_vm2, %v213_v22, -inf }
 0x246   :  { %229 = vmax.xlane.f32.xlu1 %v228_v27  ;;  %v237_v31 = vsel %vm227_vm2, %v224_v29, -inf }
 0x247   :  { %v231_v30 = vsel %vm227_vm2, %v216_v26, -inf }
 0x24a   :  { %232 = vmax.xlane.f32.xlu1 %v231_v30 }
 0x24e   :  { %238 = vmax.xlane.f32.xlu1 %v237_v31 }
 0x25b   :  { %280 = vrot.lane.b32.xlu0 %v154_v9, %s942_s16 }
 0x2d2   :  { %v236_v32 = vpop.xlane.xlu0 %235 }
 0x2d3   :  { %v242_v33 = vsub.f32 %v221_v19, %v236_v32  ;;  %v230_v34 = vpop.xlane.xlu1 %229 }
 0x2d4   :  { %v240_v35 = vsub.f32 %v213_v22, %v230_v34  ;;  %v50_v22 = vld [vmem:[%s1185_s0 + $0x8] sm:$0xff] }
 0x2d5   :  { %v248_v36 = vmul.f32 1.442695, %v242_v33 }
 0x2d6   :  { %v244_v37 = vmul.f32 1.442695, %v240_v35  ;;  %v281_v63 = vpop.permute.xlu0 %280 }
 0x2d7   :  { %869 = vpow2.f32 %v248_v36  ;;  %v233_v38 = vpop.xlane.xlu1 %232 }
 0x2d8   :  { %871 = vpow2.f32 %v244_v37  ;;  %v241_v39 = vsub.f32 %v216_v26, %v233_v38 }
 0x2da   :  { %v246_v42 = vmul.f32 1.442695, %v241_v39  ;;  %v863_v39 = vld [vmem:[%s1191_s6] sm:$0xff]  }
 0x2db   :  { %v239_v40 = vpop.xlane.xlu1 %238 }
 0x2dc   :  { %v243_v41 = vsub.f32 %v224_v29, %v239_v40  ;;  %v864_v40 = vld [vmem:[%s1191_s6 + $0x8] sm:$0xff]  }
 0x2de   :  { %v250_v43 = vmul.f32 1.442695, %v243_v41  ;;  %v865_v41 = vld [vmem:[%s1193_s8] sm:$0xff]  }
 0x2e0   :  { %873 = vpow2.f32 %v250_v43 }
 0x2e1   :  { %v870_v44 = vpop.eup %869  ;;  %875 = vpow2.f32 %v246_v42  ;;  %v866_v42 = vld [vmem:[%s1193_s8 + $0x8] sm:$0xff]  }
 0x2e2   :  { %v258_v45 = vsel %vm227_vm2, %v870_v44, 0.0  ;;  %v872_v46 = vpop.eup %871 }
 0x2e3   :  { %259 = vadd.xlane.f32.xlu1 %v258_v45  ;;  %v252_v47 = vsel %vm227_vm2, %v872_v46, 0.0 }
 0x2e7   :  { %253 = vadd.xlane.f32.xlu1 %v252_v47 }
 0x2ea   :  { %v874_v48 = vpop.eup %873 }
 0x2eb   :  { %v261_v49 = vsel %vm227_vm2, %v874_v48, 0.0  ;;  %v876_v50 = vpop.eup %875 }
 0x2ec   :  { %262 = vadd.xlane.f32.xlu1 %v261_v49  ;;  %v255_v51 = vsel %vm227_vm2, %v876_v50, 0.0 }
 0x2f0   :  { %256 = vadd.xlane.f32.xlu1 %v255_v51  ;;  %v745_v51 = vld [vmem:[%s1189_s4] ss:$0 sm:$0xff] }
 0x301   :  { %278 = vrot.lane.b32.xlu1 %v1044_v11, %s942_s16 }
 0x370   :  { %v260_v54 = vpop.xlane.xlu1 %259 }
 0x371   :  { %877 = vrcp.f32 %v260_v54 }
 0x374   :  { %v254_v55 = vpop.xlane.xlu1 %253 }
 0x375   :  { %879 = vrcp.f32 %v254_v55 }
 0x379   :  { %v263_v56 = vpop.xlane.xlu1 %262 }
 0x37a   :  { %881 = vrcp.f32 %v263_v56  ;;  %v746_v56 = vld [vmem:[%s1190_s5] ss:$0 sm:$0xff] }
 0x37b   :  { %v878_v57 = vpop.eup %877 }
 0x37c   :  { %v269_v58 = vmul.f32 %v878_v57, %v870_v44 }
 0x37d   :  { %v257_v59 = vpop.xlane.xlu1 %256 }
 0x37e   :  { %274 = vst.msk [vmem:[#allocation4 + $0x10] sm:$0xff] %vm227_vm2, %v269_v58  ;;  %883 = vrcp.f32 %v257_v59 }
 0x37f   :  { %v880_v60 = vpop.eup %879 }
 0x380   :  { %v265_v61 = vmul.f32 %v880_v60, %v872_v46 }
 0x381   :  { %v279_v62 = vpop.permute.xlu1 %278 }
 0x382   :  { %805 = vmatprep.subr.bf16.mxu1 %v279_v62  ;;  %272 = vst.msk [vmem:[#allocation4] sm:$0xff] %vm227_vm2, %v265_v61 }
 0x383   :  { %806 = vmatpush3.bf16.msra.mxu1 %v279_v62  ;;  %v868_v62 = vld [vmem:[%s1193_s8 + $0x18] sm:$0xff]  }
 0x384   :  { %v882_v0 = vpop.eup %881  ;;  %807 = vmatprep.subr.bf16.mxu1 %v281_v63 }
 0x385   :  { %v271_v1 = vmul.f32 %v882_v0, %v874_v48 }
 0x387   :  { %275 = vst.msk [vmem:[#allocation4 + $0x18] sm:$0xff] %vm227_vm2, %v271_v1  ;;  %808 = vmatpush3.bf16.msra.mxu1 %v281_v63  ;;  %v277_v6 = vpack.c.bf16 %v271_v1, %v269_v58  ;;  %v747_v63 = vld [vmem:[%s1192_s7] ss:$0 sm:$0xff]  ;;  %s945_s7 = smov [#allocation4]  }
 0x388   :  { %v884_v2 = vpop.eup %883  ;;  %813 = vmatprep.subr.bf16.mxu1 %v943_v52 }
 0x389   :  { %v267_v3 = vmul.f32 %v884_v2, %v876_v50 }
 0x38b   :  { %273 = vst.msk [vmem:[#allocation4 + $0x8] sm:$0xff] %vm227_vm2, %v267_v3  ;;  %v276_v4 = vpack.c.bf16 %v267_v3, %v265_v61  ;;  %v867_v61 = vld [vmem:[%s1193_s8 + $0x10] sm:$0xff]   ;;  %s712_s8 = sshll.u32 %s945_s7, 4  ;;  %s713_s8 = int_to_ptr.vmem [resolvable:$true] %s712_s8 }
 0x38c   :  { %p898_p1 = scmp.lt.s32.totalorder %s713_s8, %s713_s8 }
 0x38d   :  { %809 = vmatprep.mubr.msk.bf16.mxu1 %vm227_vm2, %v276_v4 }
 0x38e   :  { %810 = vmatmul.mubr.msk.bf16.vlgmr.msra.gmra.mrb[4].mxu1 %vm227_vm2, %v277_v6 }
 0x38f   :  { %814 = vmatpush3.bf16.msra.mxu1 %v861_v5  ;;  %815 = vmatprep.mubr.msk.bf16.mxu1 %vm944_vm3, %v943_v52 }
 0x390   :  { %825 = vmatprep.subr.bf16.mxu1 %v943_v52 }
 0x461   :  { %v811_v7 = vpop.f32.mrb[4].mxu1 }
 0x462   :  { %v324_v8 = vpop.f32.mrb[5].mxu1 }
 0x463   :  { %v812_v9 = vpop.f32.mrb[6].mxu1 }
 0x464   :  { %v340_v10 = vpack.c.bf16 %v812_v9, %v811_v7  ;;  %v327_v11 = vpop.f32.mrb[7].mxu1 }
 0x465   :  { %v339_v12 = vpack.c.bf16 %v327_v11, %v324_v8 }
 0x466   :  { %816 = vmatmul.mubr.msk.bf16.vlgmr.msra.gmra.mrb[8].mxu1 %vm165_vm1, %v340_v10 }
 0x467   :  { %822 = vmatmul.mubr.msk.bf16.vlgmr.msra.gmra.mrb[4].mxu0 %vm165_vm1, %v339_v12  ;;  %829 = vmatprep.mubr.msk.bf16.mxu1 %vm944_vm3, %v943_v52 }
 0x468   :  { %841 = vmatprep.mubr.msk.bf16.mxu0 %vm944_vm3, %v943_v52  ;;  %826 = vmatpush3.bf16.msra.mxu1 %v863_v39 }
 0x469   :  { %827 = vmatprep.subr.bf16.mxu1 %v943_v52  ;;  %834 = vmatpush3.bf16.msra.mxu0 %v865_v41 }
 0x46a   :  { %835 = vmatprep.subr.bf16.mxu0 %v943_v52 }
 0x46c   :  { %828 = vmatpush3.bf16.msra.mxu1 %v864_v40 }
 0x46d   :  { %836 = vmatpush3.bf16.msra.mxu0 %v866_v42 }
 0x46e   :  { %837 = vmatprep.subr.bf16.mxu0 %v943_v52 }
 0x471   :  { %838 = vmatpush3.bf16.msra.mxu0 %v867_v61 }
 0x472   :  { %839 = vmatprep.subr.bf16.mxu0 %v943_v52  ;;  %v751_v52 = vld [vmem:[%s1194_s9] ss:$0 sm:$0xff]  ;;  %s893_s9 = scalar_lea.vmem %s713_s8, 512 }
 0x473   :  { %p894_p0 = scmp.ne.s32.totalorder %s713_s8, %s893_s9  ;;  %p899_p2 = scmp.lt.s32.totalorder %s893_s9, %s893_s9 }
 0x475   :  { %840 = vmatpush3.bf16.msra.mxu0 %v868_v62  ;;  %p900_p3 = por %p899_p2, %p898_p1 }
 0x477   :  { %p901_p4 = pnand %p900_p3, %p894_p0 }
 0x539   :  { %v389_v13 = vpop.f32.mrb[8].mxu1 }
 0x53a   :  { %v817_v14 = vpop.f32.mrb[9].mxu1  ;;  %v439_v15 = vpop.f32.mrb[4].mxu0 }
 0x53b   :  { %v440_v17 = vadd.f32 %v439_v15, %v389_v13  ;;  %v392_v18 = vpop.f32.mrb[10].mxu1  ;;  %v823_v19 = vpop.f32.mrb[5].mxu0 }
 0x53c   :  { %v818_v20 = vpop.f32.mrb[11].mxu1  ;;  %v442_v21 = vpop.f32.mrb[6].mxu0 }
 0x53d   :  { %v443_v23 = vadd.f32 %v442_v21, %v392_v18  ;;  %v824_v24 = vpop.f32.mrb[7].mxu0  ;;  %v446_v25 = vadd.f32 %v440_v17, %v49_v16 }
 0x53f   :  { %v448_v26 = vsel %vm227_vm2, %v446_v25, 0.0  ;;  %v447_v27 = vadd.f32 %v443_v23, %v50_v22 }
 0x540   :  { %449 = vadd.xlane.f32.xlu1 %v448_v26 }
 0x541   :  { %v451_v28 = vsel %vm227_vm2, %v447_v27, 0.0 }
 0x542   :  { %452 = vadd.xlane.f32.xlu0 %v451_v28 }
 0x5cd   :  { %v450_v29 = vpop.xlane.xlu1 %449 }
 0x5ce   :  { %v455_v30 = vmul.f32 0.03125, %v450_v29 }
 0x5cf   :  { %v453_v31 = vpop.xlane.xlu0 %452 }
 0x5d0   :  { %v457_v32 = vsub.f32 %v446_v25, %v455_v30  ;;  %v456_v33 = vmul.f32 0.03125, %v453_v31 }
 0x5d2   :  { %v458_v34 = vsub.f32 %v447_v27, %v456_v33  ;;  %v459_v35 = vmul.f32 %v457_v32, %v457_v32 }
 0x5d4   :  { %v461_v36 = vsel %vm227_vm2, %v459_v35, 0.0  ;;  %v460_v37 = vmul.f32 %v458_v34, %v458_v34 }
 0x5d5   :  { %462 = vadd.xlane.f32.xlu1 %v461_v36 }
 0x5d6   :  { %v464_v38 = vsel %vm227_vm2, %v460_v37, 0.0 }
 0x5d9   :  { %465 = vadd.xlane.f32.xlu1 %v464_v38 }
 0x662   :  { %v463_v43 = vpop.xlane.xlu1 %462 }
 0x663   :  { %v467_v44 = vmul.f32 0.03125, %v463_v43 }
 0x665   :  { %v469_v45 = vadd.f32 1e-06, %v467_v44 }
 0x666   :  { %v466_v46 = vpop.xlane.xlu1 %465 }
 0x667   :  { %885 = vrsqrt.f32 %v469_v45  ;;  %v468_v47 = vmul.f32 0.03125, %v466_v46 }
 0x669   :  { %v470_v48 = vadd.f32 1e-06, %v468_v47 }
 0x66b   :  { %887 = vrsqrt.f32 %v470_v48 }
 0x671   :  { %v886_v49 = vpop.eup %885 }
 0x672   :  { %v473_v50 = vmul.f32 %v886_v49, %v457_v32 }
 0x674   :  { %v482_v54 = vmul.f32 %v745_v51, %v473_v50 }
 0x675   :  { %v888_v53 = vpop.eup %887 }
 0x676   :  { %v474_v55 = vmul.f32 %v888_v53, %v458_v34  ;;  %v491_v58 = vadd.f32 %v746_v56, %v482_v54 }
 0x678   :  { %v483_v57 = vmul.f32 %v745_v51, %v474_v55 }
 0x67a   :  { %v492_v59 = vadd.f32 %v746_v56, %v483_v57 }
 0x67c   :  { %v493_v60 = vpack.c.bf16 %v492_v59, %v491_v58 }
 0x67e   :  { %830 = vmatmul.mubr.msk.bf16.vlgmr.msra.gmra.mrb[12].mxu1 %vm227_vm2, %v493_v60 }
 0x751   :  { %v554_v0 = vpop.f32.mrb[12].mxu1 }
 0x752   :  { %v555_v1 = vadd.f32 %v747_v63, %v554_v0  ;;  %v831_v2 = vpop.f32.mrb[13].mxu1 }
 0x753   :  { %v557_v3 = vpop.f32.mrb[14].mxu1 }
 0x754   :  { %v558_v4 = vadd.f32 %v747_v63, %v557_v3  ;;  %v832_v5 = vpop.f32.mrb[15].mxu1  ;;  %v561_v6 = vmax.f32 %v555_v1, 0.0 }
 0x756   :  { %v562_v7 = vmax.f32 %v558_v4, 0.0 }
 0x758   :  { %v563_v8 = vpack.c.bf16 %v562_v7, %v561_v6 }
 0x75a   :  { %842 = vmatmul.mubr.msk.bf16.vlgmr.msra.gmra.mrb[8].mxu0 %vm97_vm0, %v563_v8 }
 0x82d   :  { %v640_v9 = vpop.f32.mrb[8].mxu0 }
 0x82e   :  { %v641_v10 = vadd.f32 %v751_v52, %v640_v9  ;;  %v843_v11 = vpop.f32.mrb[9].mxu0 }
 0x82f   :  { %v643_v12 = vpop.f32.mrb[10].mxu0 }
 0x830   :  { %v644_v13 = vadd.f32 %v751_v52, %v643_v12  ;;  %v844_v14 = vpop.f32.mrb[11].mxu0  ;;  %v647_v15 = vadd.f32 %v641_v10, %v491_v58 }
 0x832   :  { %v649_v16 = vsel %vm227_vm2, %v647_v15, 0.0  ;;  %v648_v17 = vadd.f32 %v644_v13, %v492_v59 }
 0x833   :  { %650 = vadd.xlane.f32.xlu1 %v649_v16 }
 0x834   :  { %v652_v18 = vsel %vm227_vm2, %v648_v17, 0.0 }
 0x835   :  { %653 = vadd.xlane.f32.xlu0 %v652_v18 }
 0x8c0   :  { %v651_v19 = vpop.xlane.xlu1 %650 }
 0x8c1   :  { %v655_v20 = vmul.f32 0.03125, %v651_v19 }
 0x8c2   :  { %v654_v21 = vpop.xlane.xlu0 %653 }
 0x8c3   :  { %v657_v22 = vsub.f32 %v647_v15, %v655_v20  ;;  %v656_v23 = vmul.f32 0.03125, %v654_v21 }
 0x8c5   :  { %v658_v24 = vsub.f32 %v648_v17, %v656_v23  ;;  %v659_v25 = vmul.f32 %v657_v22, %v657_v22 }
 0x8c7   :  { %v661_v26 = vsel %vm227_vm2, %v659_v25, 0.0  ;;  %v660_v27 = vmul.f32 %v658_v24, %v658_v24 }
 0x8c8   :  { %662 = vadd.xlane.f32.xlu1 %v661_v26 }
 0x8c9   :  { %v664_v28 = vsel %vm227_vm2, %v660_v27, 0.0 }
 0x8ca   :  { %665 = vadd.xlane.f32.xlu0 %v664_v28 }
 0x8cb   :  { %904 = shalt.err (!%p901_p4)
}
 0x8cc   :  { %s905_s21 = scalar_lea.hbm %s1199_s14, 512 }
 0x8cd   :  { %p906_p5 = scmp.ne.s32.totalorder %s1199_s14, %s905_s21  ;;  %p909_p6 = scmp.lt.u32.totalorder %s905_s21, %s1199_s14 }
 0x8cf   :  { %p911_p7 = pnand %p909_p6, %p906_p5 }
 0x8d1   :  { %914 = shalt.err (!%p911_p7)
}
 0x8d2   :  { %s946_s2 = smov 128   ;;  %s947_s1 = smov 8   ;;  %v757_v36 = vld [vmem:[%s1195_s10] ss:$0 sm:$0xff] }
 0x8d3   :  { %718 = dma.vmem_to_hbm [thread:$0]  %s713_s8, 512, %s1199_s14, [#allocation5], %s946_s2, %s946_s2, %s947_s1  }
 0x8d4   :  { %v758_v39 = vld [vmem:[%s1196_s11] ss:$0 sm:$0xff]  ;;  %s948_s14 = smov [#allocation2]  }
 0x8d5   :  { %s700_s30 = sshll.u32 %s948_s14, 4  ;;  %s701_s30 = int_to_ptr.vmem [resolvable:$true] %s700_s30 }
 0x8d6   :  { %s915_s15 = scalar_lea.vmem %s701_s30, 256  ;;  %p920_p9 = scmp.lt.s32.totalorder %s701_s30, %s701_s30 }
 0x8d7   :  { %p916_p8 = scmp.ne.s32.totalorder %s701_s30, %s915_s15  ;;  %p921_p10 = scmp.lt.s32.totalorder %s915_s15, %s915_s15 }
 0x8d9   :  { %p922_p11 = por %p921_p10, %p920_p9 }
 0x8db   :  { %p923_p12 = pnand %p922_p11, %p916_p8 }
 0x955   :  { %v663_v29 = vpop.xlane.xlu1 %662 }
 0x956   :  { %v667_v30 = vmul.f32 0.03125, %v663_v29 }
 0x957   :  { %v666_v31 = vpop.xlane.xlu0 %665 }
 0x958   :  { %v669_v32 = vadd.f32 1e-06, %v667_v30  ;;  %v668_v33 = vmul.f32 0.03125, %v666_v31 }
 0x95a   :  { %889 = vrsqrt.f32 %v669_v32  ;;  %v670_v34 = vadd.f32 1e-06, %v668_v33 }
 0x95c   :  { %891 = vrsqrt.f32 %v670_v34 }
 0x964   :  { %v890_v35 = vpop.eup %889 }
 0x965   :  { %v673_v37 = vmul.f32 %v890_v35, %v657_v22 }
 0x966   :  { %v892_v38 = vpop.eup %891 }
 0x967   :  { %v674_v40 = vmul.f32 %v892_v38, %v658_v24  ;;  %v682_v41 = vmul.f32 %v757_v36, %v673_v37 }
 0x969   :  { %v683_v42 = vmul.f32 %v757_v36, %v674_v40  ;;  %v691_v43 = vadd.f32 %v758_v39, %v682_v41 }
 0x96b   :  { %v692_v44 = vadd.f32 %v758_v39, %v683_v42  ;;  %693 = vst.msk [vmem:[#allocation2] sm:$0xff] %vm227_vm2, %v691_v43 }
 0x96d   :  { %694 = vst.msk [vmem:[#allocation2 + $0x8] sm:$0xff] %vm227_vm2, %v692_v44 }
 0x96e   :  { %926 = shalt.err (!%p923_p12)
}
 0x96f   :  { %s927_s16 = scalar_lea.hbm %s1198_s13, 256 }
 0x970   :  { %p928_p13 = scmp.ne.s32.totalorder %s1198_s13, %s927_s16  ;;  %p931_p0 = scmp.lt.u32.totalorder %s927_s16, %s1198_s13 }
 0x972   :  { %p933_p1 = pnand %p931_p0, %p928_p13 }
 0x974   :  { %936 = shalt.err (!%p933_p1)
}
 0x975   :  { %706 = dma.vmem_to_hbm [thread:$0]  %s701_s30, 256, %s1198_s13, [#allocation3], %s946_s2, %s946_s2, %s947_s1  }
 0x976   :  { %937 = dma.done.wait [#allocation3], 256  }
 0x977   :  { %938 = vsyncadd [#allocation3], 4294967040 }
 0x978   :  { %939 = dma.done.wait [#allocation5], 512  }
 0x979   :  { %940 = vsyncadd [#allocation5], 4294966784 }
 0x97a   :  { %725 = vsyncpa [#allocation3], 1 }
 0x97b   :  { %726 = vsyncpa [#allocation5], 1 }

</bundles_post_ra>
